<compile_context>
chip_gen: v7x
topology: tpu7x:2x2x1
jax: 0.10.0
libtpu: 0.0.40
codegen_flags: <defaults>
</compile_context>

<pallas_src>
import math
import jax
import jax.numpy as jnp
from jax import lax
from jax.experimental import pallas as pl
from jax.experimental.pallas import tpu as pltpu


# ----------------------------------------------------------------------------
# Kernel: one sequence block of the LSTM recurrence per grid step.
#   x_ref:[B,T,I]  h0/c0:[B,H]  wx:[I,4H]  wh:[H,4H]  b:[1,4H]
#   hseq:[T,B,H]   h_out/c_out:[B,H]
#   scratch: h_sc/c_sc:[B,H] carried across grid steps, xw_sc:[B,T,4H]
# ----------------------------------------------------------------------------
def lstm_seq_kernel(x_ref, h0_ref, c0_ref, wx_ref, wh_ref, b_ref,
                    hseq_ref, h_out_ref, c_out_ref,
                    h_sc, c_sc, xw_sc):
    B, T, I = x_ref.shape
    H = h0_ref.shape[1]

    # First grid step: seed the carried state from the initial (h, c).
    @pl.when(pl.program_id(0) == 0)
    def _():
        h_sc[...] = h0_ref[...]
        c_sc[...] = c0_ref[...]

    # Hoisted input projection for this block: one MXU matmul over all T
    # timesteps (M = B*T), bias folded in. Columns ordered (i, f, o, g).
    x2 = x_ref[...].reshape(B * T, I)
    xw_sc[...] = (jnp.dot(x2, wx_ref[...], preferred_element_type=jnp.float32)
                  + b_ref[...]).reshape(B, T, 4 * H)

    wh = wh_ref[...]  # resident recurrent weights

    def step(t, carry):
        h, c = carry
        # Only the small recurrent matmul remains on the serial path.
        z = xw_sc[:, t, :] + jnp.dot(h, wh,
                                     preferred_element_type=jnp.float32)  # [B,4H]
        sig = jax.nn.sigmoid(z[:, :3 * H])    # i | f | o  (contiguous lanes)
        g = jnp.tanh(z[:, 3 * H:])            # g
        i = sig[:, :H]
        f = sig[:, H:2 * H]
        o = sig[:, 2 * H:3 * H]
        c_next = f * c + i * g
        h_next = o * jnp.tanh(c_next)
        hseq_ref[t] = h_next
        return h_next, c_next

    h_fin, c_fin = lax.fori_loop(0, T, step, (h_sc[...], c_sc[...]),
                                 unroll=min(4, T))
    h_sc[...] = h_fin
    c_sc[...] = c_fin

    # Last grid step: emit the final (h, c).
    @pl.when(pl.program_id(0) == pl.num_programs(0) - 1)
    def _():
        h_out_ref[...] = h_fin
        c_out_ref[...] = c_fin


def _pick_block_t(S):
    """Sequence-block length: the largest multiple of 8 (<= 64) dividing S.

    Keeps the double-buffered x / hseq / xW blocks small enough for v7x's
    64 MiB VMEM while still giving the hoisted matmul B*T rows of MXU fill;
    falls back to the whole sequence (single block) when nothing divides.
    """
    if S <= 8:
        return S
    for t in (64, 32, 16, 8):
        if S % t == 0:
            return t
    return S


def lstm_forward_pallas(x, h0, c0, wx_t, wh_t, b_row, *, block_t=None):
    """x:[B,S,I]  h0/c0:[B,H]  wx_t:[I,4H]  wh_t:[H,4H]  b_row:[1,4H].
    Returns (hidden_seq [S,B,H], h_fin [B,H], c_fin [B,H])."""
    B, S, I = x.shape
    H = h0.shape[1]
    if block_t is None:
        block_t = _pick_block_t(S)
    assert S % block_t == 0 and (block_t == S or block_t % 8 == 0), \
        "block_t must divide S and be a multiple of 8 (or the whole sequence)"
    grid = (S // block_t,)

    return pl.pallas_call(
        lstm_seq_kernel,
        out_shape=(jax.ShapeDtypeStruct((S, B, H), jnp.float32),
                   jax.ShapeDtypeStruct((B, H), jnp.float32),
                   jax.ShapeDtypeStruct((B, H), jnp.float32)),
        grid=grid,
        in_specs=[
            pl.BlockSpec((B, block_t, I), lambda s: (0, s, 0)),  # x: streamed over S
            pl.BlockSpec((B, H), lambda s: (0, 0)),              # h0 (resident)
            pl.BlockSpec((B, H), lambda s: (0, 0)),              # c0 (resident)
            pl.BlockSpec((I, 4 * H), lambda s: (0, 0)),          # Wx (resident)
            pl.BlockSpec((H, 4 * H), lambda s: (0, 0)),          # Wh (resident)
            pl.BlockSpec((1, 4 * H), lambda s: (0, 0)),          # fused bias
        ],
        out_specs=(
            pl.BlockSpec((block_t, B, H), lambda s: (s, 0, 0)),  # hidden_seq
            pl.BlockSpec((B, H), lambda s: (0, 0)),              # h_out
            pl.BlockSpec((B, H), lambda s: (0, 0)),              # c_out
        ),
        scratch_shapes=[
            pltpu.VMEM((B, H), jnp.float32),                # carried h
            pltpu.VMEM((B, H), jnp.float32),                # carried c
            pltpu.VMEM((B, block_t, 4 * H), jnp.float32),   # hoisted x@Wx + b
        ],
        compiler_params=pltpu.CompilerParams(
            dimension_semantics=("arbitrary",)),   # recurrence is serial in S
    )(x, h0, c0, wx_t, wh_t, b_row)


# ----------------------------------------------------------------------------
# One-time weight packing (hoisted out of the forward path).
# ----------------------------------------------------------------------------
def pack_lstm_weights(params):
    """Concatenate per-gate weights into (i,f,o,g)-ordered, pre-transposed slabs."""
    wx_t = jnp.concatenate(
        [params["w_ii"], params["w_if"], params["w_io"], params["w_ig"]],
        axis=0).T                                               # [I, 4H]
    wh_t = jnp.concatenate(
        [params["w_hi"], params["w_hf"], params["w_ho"], params["w_hg"]],
        axis=0).T                                               # [H, 4H]
    b_row = jnp.concatenate(
        [params["b_ii"] + params["b_hi"],
         params["b_if"] + params["b_hf"],
         params["b_io"] + params["b_ho"],
         params["b_ig"] + params["b_hg"]], axis=0).T            # [1, 4H]
    return wx_t, wh_t, b_row


def init_naive_lstm_params(key, input_size, hidden_size):
    """Deterministic init matching NaiveLSTM.reset_weigths (uniform +/-1/sqrt(H))."""
    stdv = 1.0 / math.sqrt(hidden_size)
    names_shapes = []
    for gate in ("i", "f", "o", "g"):
        names_shapes += [
            (f"w_i{gate}", (hidden_size, input_size)),
            (f"w_h{gate}", (hidden_size, hidden_size)),
            (f"b_i{gate}", (hidden_size, 1)),
            (f"b_h{gate}", (hidden_size, 1)),
        ]
    keys = jax.random.split(key, len(names_shapes))
    params = {}
    for (name, shape), k in zip(names_shapes, keys):
        params[name] = jax.random.uniform(
            k, shape, jnp.float32, minval=-stdv, maxval=stdv)
    return params


# ----------------------------------------------------------------------------
# Module-level forward, mirroring NaiveLSTM.forward semantics.
# ----------------------------------------------------------------------------
def naive_lstm_forward(inputs, state, packed_weights, hidden_size, *,
                       block_t=None):
    """inputs: [B, S, input_size]; state: ([1, B, H], [1, B, H]) or None.
    Returns (hidden_seq [S, B, H], (h_next [1, B, H], c_next [1, B, H]))."""
    H = hidden_size
    B = inputs.shape[0]
    wx_t, wh_t, b_row = packed_weights

    if state is None:
        h_row = jnp.zeros((B, H), jnp.float32)
        c_row = jnp.zeros((B, H), jnp.float32)
    else:
        h, c = state
        h_row = h.reshape(B, H)     # squeeze(0) then .t() -> kept in row form
        c_row = c.reshape(B, H)

    hidden_seq, h_fin, c_fin = lstm_forward_pallas(
        inputs, h_row, c_row, wx_t, wh_t, b_row, block_t=block_t)
    return hidden_seq, (h_fin.reshape(1, B, H), c_fin.reshape(1, B, H))


# ----------------------------------------------------------------------------
# Pure-JAX reference replicating the PyTorch math exactly (column vectors),
# looped over the sequence (validates the S>1 path too).
# ----------------------------------------------------------------------------
def _reference_forward_seq(inputs, state, params, hidden_size):
    H = hidden_size
    B, S, _ = inputs.shape
    h, c = state
    h_t = h.reshape(B, H).T
    c_t = c.reshape(B, H).T
    sig = jax.nn.sigmoid
    hs = []
    for t in range(S):
        x = inputs[:, t, :].T
        i = sig(params["w_ii"] @ x + params["b_ii"] + params["w_hi"] @ h_t + params["b_hi"])
        f = sig(params["w_if"] @ x + params["b_if"] + params["w_hf"] @ h_t + params["b_hf"])
        g = jnp.tanh(params["w_ig"] @ x + params["b_ig"] + params["w_hg"] @ h_t + params["b_hg"])
        o = sig(params["w_io"] @ x + params["b_io"] + params["w_ho"] @ h_t + params["b_ho"])
        c_t = f * c_t + i * g
        h_t = o * jnp.tanh(c_t)
        hs.append(h_t.T.reshape(1, B, H))
    return (jnp.concatenate(hs, axis=0),
            h_t.T.reshape(1, B, H), c_t.T.reshape(1, B, H))


if __name__ == "__main__":
    input_size, hidden_size = 10, 32         # module spec: inputs [1, 1, 10]
    key = jax.random.PRNGKey(0)
    k_params, k_x1, k_h1, k_c1, k_x2, k_h2, k_c2 = jax.random.split(key, 7)

    params = init_naive_lstm_params(k_params, input_size, hidden_size)
    packed = pack_lstm_weights(params)       # one-time prep, outside the fwd

    # --- Case 1: the module's actual spec (B=1, S=1) -------------------------
    B1, S1 = 1, 1
    inputs1 = jax.random.normal(k_x1, (B1, S1, input_size), jnp.float32)
    h01 = jax.random.normal(k_h1, (1, B1, hidden_size), jnp.float32)
    c01 = jax.random.normal(k_c1, (1, B1, hidden_size), jnp.float32)

    hseq1, (h1, c1) = naive_lstm_forward(inputs1, (h01, c01), packed, hidden_size)
    jax.block_until_ready((hseq1, h1, c1))

    hseq1_ref, h1_ref, c1_ref = _reference_forward_seq(
        inputs1, (h01, c01), params, hidden_size)
    assert hseq1.shape == (S1, B1, hidden_size)
    assert h1.shape == (1, B1, hidden_size) and c1.shape == (1, B1, hidden_size)
    assert jnp.allclose(h1, h1_ref, atol=1e-5), "h mismatch (S=1)"
    assert jnp.allclose(c1, c1_ref, atol=1e-5), "c mismatch (S=1)"
    assert jnp.allclose(hseq1, hseq1_ref, atol=1e-5), "hidden_seq mismatch (S=1)"

    # --- Case 2: sequence path (B=1, S=16, two grid blocks of T=8) -----------
    B2, S2 = 1, 16
    inputs2 = jax.random.normal(k_x2, (B2, S2, input_size), jnp.float32)
    h02 = jax.random.normal(k_h2, (1, B2, hidden_size), jnp.float32)
    c02 = jax.random.normal(k_c2, (1, B2, hidden_size), jnp.float32)

    hseq2, (h2, c2) = naive_lstm_forward(inputs2, (h02, c02), packed,
                                         hidden_size, block_t=8)
    jax.block_until_ready((hseq2, h2, c2))

    hseq2_ref, h2_ref, c2_ref = _reference_forward_seq(
        inputs2, (h02, c02), params, hidden_size)
    assert hseq2.shape == (S2, B2, hidden_size)
    assert jnp.allclose(hseq2, hseq2_ref, atol=1e-4), "hidden_seq mismatch (S=16)"
    assert jnp.allclose(h2, h2_ref, atol=1e-4), "h mismatch (S=16)"
    assert jnp.allclose(c2, c2_ref, atol=1e-4), "c mismatch (S=16)"

    print("KERNEL_OK")
</pallas_src>

<mosaic_0001>
module attributes {stable_mosaic.version = 11 : i64} {
  func.func @lstm_seq_kernel(%arg0: i32, %arg1: memref<1x1x10xf32, #tpu.memory_space<vmem>>, %arg2: memref<1x32xf32, #tpu.memory_space<vmem>>, %arg3: memref<1x32xf32, #tpu.memory_space<vmem>>, %arg4: memref<10x128xf32, #tpu.memory_space<vmem>>, %arg5: memref<32x128xf32, #tpu.memory_space<vmem>>, %arg6: memref<1x128xf32, #tpu.memory_space<vmem>>, %arg7: memref<1x1x32xf32, #tpu.memory_space<vmem>>, %arg8: memref<1x32xf32, #tpu.memory_space<vmem>>, %arg9: memref<1x32xf32, #tpu.memory_space<vmem>>, %arg10: memref<1x32xf32, #tpu.memory_space<vmem>>, %arg11: memref<1x32xf32, #tpu.memory_space<vmem>>, %arg12: memref<1x1x128xf32, #tpu.memory_space<vmem>>) attributes {dimension_semantics = [#tpu.dimension_semantics<arbitrary>], iteration_bounds = array<i64: 1>, scalar_prefetch = 0 : i64, scratch_operands = 3 : i64, tpu.core_type = #tpu.core_type<tc>, window_params = [{transform_indices = @transform_0, window_bounds = array<i64: 1, 1, 10>}, {pipeline_mode = #tpu.pipeline_mode<synchronous>, transform_indices = @transform_1, window_bounds = array<i64: 1, 32>}, {pipeline_mode = #tpu.pipeline_mode<synchronous>, transform_indices = @transform_2, window_bounds = array<i64: 1, 32>}, {pipeline_mode = #tpu.pipeline_mode<synchronous>, transform_indices = @transform_3, window_bounds = array<i64: 10, 128>}, {pipeline_mode = #tpu.pipeline_mode<synchronous>, transform_indices = @transform_4, window_bounds = array<i64: 32, 128>}, {pipeline_mode = #tpu.pipeline_mode<synchronous>, transform_indices = @transform_5, window_bounds = array<i64: 1, 128>}, {transform_indices = @transform_6, window_bounds = array<i64: 1, 1, 32>}, {pipeline_mode = #tpu.pipeline_mode<synchronous>, transform_indices = @transform_7, window_bounds = array<i64: 1, 32>}, {pipeline_mode = #tpu.pipeline_mode<synchronous>, transform_indices = @transform_8, window_bounds = array<i64: 1, 32>}]} {
    %c0_i32 = arith.constant 0 : i32
    %0 = arith.cmpi eq, %arg0, %c0_i32 : i32
    %1 = arith.extui %0 : i1 to i32
    %c0_i32_0 = arith.constant 0 : i32
    %2 = arith.cmpi ne, %1, %c0_i32_0 : i32
    scf.if %2 {
      %c0_29 = arith.constant 0 : index
      %c0_30 = arith.constant 0 : index
      %44 = vector.load %arg2[%c0_29, %c0_30] : memref<1x32xf32, #tpu.memory_space<vmem>>, vector<1x32xf32>
      %c0_31 = arith.constant 0 : index
      %c0_32 = arith.constant 0 : index
      %45 = vector.load %arg10[%c0_31, %c0_32] : memref<1x32xf32, #tpu.memory_space<vmem>>, vector<1x32xf32>
      tpu.vector_store %arg10[%c0_31, %c0_32], %44 {strides = array<i32>} : memref<1x32xf32, #tpu.memory_space<vmem>>, vector<1x32xf32>,
      %c0_33 = arith.constant 0 : index
      %c0_34 = arith.constant 0 : index
      %46 = vector.load %arg3[%c0_33, %c0_34] : memref<1x32xf32, #tpu.memory_space<vmem>>, vector<1x32xf32>
      %c0_35 = arith.constant 0 : index
      %c0_36 = arith.constant 0 : index
      %47 = vector.load %arg11[%c0_35, %c0_36] : memref<1x32xf32, #tpu.memory_space<vmem>>, vector<1x32xf32>
      tpu.vector_store %arg11[%c0_35, %c0_36], %46 {strides = array<i32>} : memref<1x32xf32, #tpu.memory_space<vmem>>, vector<1x32xf32>,
    } else {
    }
    %c0 = arith.constant 0 : index
    %c0_1 = arith.constant 0 : index
    %c0_2 = arith.constant 0 : index
    %3 = vector.load %arg1[%c0, %c0_1, %c0_2] : memref<1x1x10xf32, #tpu.memory_space<vmem>>, vector<1x1x10xf32>
    %4 = vector.shape_cast %3 : vector<1x1x10xf32> to vector<1x10xf32>
    %c0_3 = arith.constant 0 : index
    %c0_4 = arith.constant 0 : index
    %5 = vector.load %arg4[%c0_3, %c0_4] : memref<10x128xf32, #tpu.memory_space<vmem>>, vector<10x128xf32>
    %cst = arith.constant dense<0.000000e+00> : vector<1x128xf32>
    %6 = tpu.matmul %4, %5, %cst {dimension_numbers = #tpu.dot_dimension_numbers<[1], [0], [0], [1], [0, 0, 1, 1], [], []>} : vector<1x10xf32>, vector<10x128xf32>, vector<1x128xf32> -> vector<1x128xf32>
    %c0_5 = arith.constant 0 : index
    %c0_6 = arith.constant 0 : index
    %7 = vector.load %arg6[%c0_5, %c0_6] : memref<1x128xf32, #tpu.memory_space<vmem>>, vector<1x128xf32>
    %8 = arith.addf %6, %7 : vector<1x128xf32>
    %9 = vector.shape_cast %8 : vector<1x128xf32> to vector<1x1x128xf32>
    %c0_7 = arith.constant 0 : index
    %c0_8 = arith.constant 0 : index
    %c0_9 = arith.constant 0 : index
    %10 = vector.load %arg12[%c0_7, %c0_8, %c0_9] : memref<1x1x128xf32, #tpu.memory_space<vmem>>, vector<1x1x128xf32>
    tpu.vector_store %arg12[%c0_7, %c0_8, %c0_9], %9 {strides = array<i32>} : memref<1x1x128xf32, #tpu.memory_space<vmem>>, vector<1x1x128xf32>,
    %c0_10 = arith.constant 0 : index
    %c0_11 = arith.constant 0 : index
    %11 = vector.load %arg5[%c0_10, %c0_11] : memref<32x128xf32, #tpu.memory_space<vmem>>, vector<32x128xf32>
    %c0_12 = arith.constant 0 : index
    %c0_13 = arith.constant 0 : index
    %12 = vector.load %arg10[%c0_12, %c0_13] : memref<1x32xf32, #tpu.memory_space<vmem>>, vector<1x32xf32>
    %c0_14 = arith.constant 0 : index
    %c0_15 = arith.constant 0 : index
    %13 = vector.load %arg11[%c0_14, %c0_15] : memref<1x32xf32, #tpu.memory_space<vmem>>, vector<1x32xf32>
    %c0_i32_16 = arith.constant 0 : i32
    %c0_17 = arith.constant 0 : index
    %14 = arith.index_cast %c0_i32_16 : i32 to index
    %c0_18 = arith.constant 0 : index
    %15 = vector.load %arg12[%c0_17, %14, %c0_18] : memref<1x1x128xf32, #tpu.memory_space<vmem>>, vector<1x1x128xf32>
    %16 = vector.shape_cast %15 : vector<1x1x128xf32> to vector<1x128xf32>
    %cst_19 = arith.constant dense<0.000000e+00> : vector<1x128xf32>
    %17 = tpu.matmul %12, %11, %cst_19 {dimension_numbers = #tpu.dot_dimension_numbers<[1], [0], [0], [1], [0, 0, 1, 1], [], []>} : vector<1x32xf32>, vector<32x128xf32>, vector<1x128xf32> -> vector<1x128xf32>
    %18 = arith.addf %16, %17 : vector<1x128xf32>
    %19 = vector.extract_strided_slice %18 {offsets = [0, 0], sizes = [1, 96], strides = [1, 1]} : vector<1x128xf32> to vector<1x96xf32>
    %20 = arith.negf %19 : vector<1x96xf32>
    %21 = math.exp %20 : vector<1x96xf32>
    %cst_20 = arith.constant 1.000000e+00 : f32
    %22 = vector.broadcast %cst_20 : f32 to vector<1x96xf32>
    %23 = arith.addf %22, %21 : vector<1x96xf32>
    %24 = arith.divf %22, %23 : vector<1x96xf32>
    %25 = vector.extract_strided_slice %18 {offsets = [0, 96], sizes = [1, 32], strides = [1, 1]} : vector<1x128xf32> to vector<1x32xf32>
    %26 = math.tanh %25 : vector<1x32xf32>
    %27 = vector.extract_strided_slice %24 {offsets = [0, 0], sizes = [1, 32], strides = [1, 1]} : vector<1x96xf32> to vector<1x32xf32>
    %28 = vector.extract_strided_slice %24 {offsets = [0, 32], sizes = [1, 32], strides = [1, 1]} : vector<1x96xf32> to vector<1x32xf32>
    %29 = vector.extract_strided_slice %24 {offsets = [0, 64], sizes = [1, 32], strides = [1, 1]} : vector<1x96xf32> to vector<1x32xf32>
    %30 = arith.mulf %28, %13 : vector<1x32xf32>
    %31 = arith.mulf %27, %26 : vector<1x32xf32>
    %32 = arith.addf %30, %31 : vector<1x32xf32>
    %33 = math.tanh %32 : vector<1x32xf32>
    %34 = arith.mulf %29, %33 : vector<1x32xf32>
    %35 = arith.index_cast %c0_i32_16 : i32 to index
    %c0_21 = arith.constant 0 : index
    %c0_22 = arith.constant 0 : index
    %36 = vector.load %arg7[%35, %c0_21, %c0_22] : memref<1x1x32xf32, #tpu.memory_space<vmem>>, vector<1x1x32xf32>
    %37 = vector.shape_cast %36 : vector<1x1x32xf32> to vector<1x32xf32>
    %38 = vector.shape_cast %34 : vector<1x32xf32> to vector<1x1x32xf32>
    tpu.vector_store %arg7[%35, %c0_21, %c0_22], %38 {strides = array<i32>} : memref<1x1x32xf32, #tpu.memory_space<vmem>>, vector<1x1x32xf32>,
    %c1_i32 = arith.constant 1 : i32
    %c0_23 = arith.constant 0 : index
    %c0_24 = arith.constant 0 : index
    %39 = vector.load %arg10[%c0_23, %c0_24] : memref<1x32xf32, #tpu.memory_space<vmem>>, vector<1x32xf32>
    tpu.vector_store %arg10[%c0_23, %c0_24], %34 {strides = array<i32>} : memref<1x32xf32, #tpu.memory_space<vmem>>, vector<1x32xf32>,
    %c0_25 = arith.constant 0 : index
    %c0_26 = arith.constant 0 : index
    %40 = vector.load %arg11[%c0_25, %c0_26] : memref<1x32xf32, #tpu.memory_space<vmem>>, vector<1x32xf32>
    tpu.vector_store %arg11[%c0_25, %c0_26], %32 {strides = array<i32>} : memref<1x32xf32, #tpu.memory_space<vmem>>, vector<1x32xf32>,
    %c0_i32_27 = arith.constant 0 : i32
    %41 = arith.cmpi eq, %arg0, %c0_i32_27 : i32
    %42 = arith.extui %41 : i1 to i32
    %c0_i32_28 = arith.constant 0 : i32
    %43 = arith.cmpi ne, %42, %c0_i32_28 : i32
    scf.if %43 {
      %c0_29 = arith.constant 0 : index
      %c0_30 = arith.constant 0 : index
      %44 = vector.load %arg8[%c0_29, %c0_30] : memref<1x32xf32, #tpu.memory_space<vmem>>, vector<1x32xf32>
      tpu.vector_store %arg8[%c0_29, %c0_30], %34 {strides = array<i32>} : memref<1x32xf32, #tpu.memory_space<vmem>>, vector<1x32xf32>,
      %c0_31 = arith.constant 0 : index
      %c0_32 = arith.constant 0 : index
      %45 = vector.load %arg9[%c0_31, %c0_32] : memref<1x32xf32, #tpu.memory_space<vmem>>, vector<1x32xf32>
      tpu.vector_store %arg9[%c0_31, %c0_32], %32 {strides = array<i32>} : memref<1x32xf32, #tpu.memory_space<vmem>>, vector<1x32xf32>,
    } else {
    }
    return
  }
  func.func @transform_0(%arg0: i32) -> (i32, i32, i32) {
    %c0_i32 = arith.constant 0 : i32
    %c0_i32_0 = arith.constant 0 : i32
    %c0_i32_1 = arith.constant 0 : i32
    return %c0_i32, %arg0, %c0_i32_0 : i32, i32, i32
  }
  func.func @transform_1(%arg0: i32) -> (i32, i32) {
    %c0_i32 = arith.constant 0 : i32
    %c0_i32_0 = arith.constant 0 : i32
    %c0_i32_1 = arith.constant 0 : i32
    return %c0_i32, %c0_i32_0 : i32, i32
  }
  func.func @transform_2(%arg0: i32) -> (i32, i32) {
    %c0_i32 = arith.constant 0 : i32
    %c0_i32_0 = arith.constant 0 : i32
    %c0_i32_1 = arith.constant 0 : i32
    return %c0_i32, %c0_i32_0 : i32, i32
  }
  func.func @transform_3(%arg0: i32) -> (i32, i32) {
    %c0_i32 = arith.constant 0 : i32
    %c0_i32_0 = arith.constant 0 : i32
    %c0_i32_1 = arith.constant 0 : i32
    return %c0_i32, %c0_i32_0 : i32, i32
  }
  func.func @transform_4(%arg0: i32) -> (i32, i32) {
    %c0_i32 = arith.constant 0 : i32
    %c0_i32_0 = arith.constant 0 : i32
    %c0_i32_1 = arith.constant 0 : i32
    return %c0_i32, %c0_i32_0 : i32, i32
  }
  func.func @transform_5(%arg0: i32) -> (i32, i32) {
    %c0_i32 = arith.constant 0 : i32
    %c0_i32_0 = arith.constant 0 : i32
    %c0_i32_1 = arith.constant 0 : i32
    return %c0_i32, %c0_i32_0 : i32, i32
  }
  func.func @transform_6(%arg0: i32) -> (i32, i32, i32) {
    %c0_i32 = arith.constant 0 : i32
    %c0_i32_0 = arith.constant 0 : i32
    %c0_i32_1 = arith.constant 0 : i32
    return %arg0, %c0_i32, %c0_i32_0 : i32, i32, i32
  }
  func.func @transform_7(%arg0: i32) -> (i32, i32) {
    %c0_i32 = arith.constant 0 : i32
    %c0_i32_0 = arith.constant 0 : i32
    %c0_i32_1 = arith.constant 0 : i32
    return %c0_i32, %c0_i32_0 : i32, i32
  }
  func.func @transform_8(%arg0: i32) -> (i32, i32) {
    %c0_i32 = arith.constant 0 : i32
    %c0_i32_0 = arith.constant 0 : i32
    %c0_i32_1 = arith.constant 0 : i32
    return %c0_i32, %c0_i32_0 : i32, i32
  }
}

</mosaic_0001>

<bundles_post_ra>
// kernel: tpu_custom_call.1
= control target key start
LH: loop header
LB: loop body
LE: loop exit
PB: predicated region body
PF: predicated region fallthrough
CT: control target
= control target key end

     0   :  { %14 = vsyncpa [#allocation6], 0  ;;  %s710_s0 = inlined_call_operand.hbm [shape: f32[1,1,10], index: 0, kind: input, shape index: {}]   ;;  %s711_s1 = inlined_call_operand.vmem [shape: f32[1,32], index: 1, kind: input, shape index: {}]   ;;  %s712_s2 = inlined_call_operand.vmem [shape: f32[1,32], index: 2, kind: input, shape index: {}]   ;;  %s713_s3 = inlined_call_operand.hbm [shape: f32[10,128], index: 3, kind: input, shape index: {}]   ;;  %s714_s4 = inlined_call_operand.hbm [shape: f32[32,128], index: 4, kind: input, shape index: {}]   ;;  %s715_s5 = inlined_call_operand.vmem [shape: f32[1,128], index: 5, kind: input, shape index: {}]   ;;  %s716_s6 = inlined_call_operand.hbm [shape: f32[1,1,32], index: 6, kind: output, shape index: {0}]   ;;  %s717_s7 = inlined_call_operand.hbm [shape: f32[1,32], index: 7, kind: output, shape index: {1}]   ;;  %s718_s8 = inlined_call_operand.hbm [shape: f32[1,32], index: 8, kind: output, shape index: {2}]  }
   0x1   :  { %15 = vsyncpa [#allocation9], 0 }
   0x2   :  { %16 = vsyncpa [#allocation7], 0 }
   0x3   :  { %17 = vsyncpa [#allocation13], 0  ;;  %s540_s27 = smov [#allocation8]   ;;  %s400_s9 = scalar_lea.hbm %s713_s3, 256 }
   0x4   :  { %s37_s28 = sshll.u32 %s540_s27, 4  ;;  %p401_p0 = scmp.ne.s32.totalorder %s713_s3, %s400_s9  ;;  %s38_s28 = int_to_ptr.vmem [resolvable:$true] %s37_s28 }
   0x5   :  { %p404_p1 = scmp.lt.u32.totalorder %s400_s9, %s713_s3 }
   0x7   :  { %p406_p2 = pnand %p404_p1, %p401_p0 }
   0x9   :  { %409 = shalt.err (!%p406_p2)
}
   0xa   :  { %s410_s14 = scalar_lea.vmem %s38_s28, 256  ;;  %p415_p4 = scmp.lt.s32.totalorder %s38_s28, %s38_s28 }
   0xb   :  { %p411_p3 = scmp.ne.s32.totalorder %s38_s28, %s410_s14  ;;  %p416_p5 = scmp.lt.s32.totalorder %s410_s14, %s410_s14 }
   0xd   :  { %p417_p6 = por %p416_p5, %p415_p4 }
   0xf   :  { %p418_p7 = pnand %p417_p6, %p411_p3 }
  0x11   :  { %421 = shalt.err (!%p418_p7)
}
  0x12   :  { %s541_s15 = smov 128   ;;  %s542_s16 = smov 8  }
  0x13   :  { %43 = dma.hbm_to_vmem [thread:$0]  %s713_s3, 256, %s38_s28, [#allocation9], %s541_s15, %s541_s15, %s542_s16  }
  0x14   :  { %s543_s19 = smov [#allocation5]   ;;  %s544_s21 = smov [#allocation10]  }
  0x15   :  { %s24_s20 = sshll.u32 %s543_s19, 4  ;;  %s49_s22 = sshll.u32 %s544_s21, 4  ;;  %s25_s20 = int_to_ptr.vmem [resolvable:$true] %s24_s20  ;;  %s50_s22 = int_to_ptr.vmem [resolvable:$true] %s49_s22 }
  0x16   :  { %s422_s25 = scalar_lea.hbm %s710_s0, 16 }
  0x17   :  { %p423_p8 = scmp.ne.s32.totalorder %s710_s0, %s422_s25  ;;  %p426_p9 = scmp.lt.u32.totalorder %s422_s25, %s710_s0 }
  0x19   :  { %p428_p10 = pnand %p426_p9, %p423_p8 }
  0x1b   :  { %431 = shalt.err (!%p428_p10)
}
  0x1c   :  { %s432_s3 = scalar_lea.vmem %s25_s20, 16  ;;  %s436_s28 = scalar_lea.vmem %s25_s20, 32 }
  0x1d   :  { %p433_p11 = scmp.ne.s32.totalorder %s25_s20, %s432_s3  ;;  %p437_p12 = scmp.lt.s32.totalorder %s25_s20, %s25_s20 }
  0x1e   :  { %p438_p13 = scmp.lt.s32.totalorder %s436_s28, %s432_s3 }
  0x20   :  { %p439_p0 = por %p438_p13, %p437_p12 }
  0x22   :  { %p440_p1 = pnand %p439_p0, %p433_p11 }
  0x24   :  { %443 = shalt.err (!%p440_p1)
}
  0x25   :  { %27 = dma.hbm_to_vmem [thread:$0]  %s710_s0, 16, %s25_s20, [#allocation6]  }
  0x26   :  { %s444_s13 = scalar_lea.hbm %s714_s4, 512 }
  0x27   :  { %p445_p2 = scmp.ne.s32.totalorder %s714_s4, %s444_s13  ;;  %p448_p3 = scmp.lt.u32.totalorder %s444_s13, %s714_s4 }
  0x29   :  { %p450_p4 = pnand %p448_p3, %p445_p2 }
  0x2b   :  { %453 = shalt.err (!%p450_p4)
}
  0x2c   :  { %s454_s21 = scalar_lea.vmem %s50_s22, 512  ;;  %p459_p6 = scmp.lt.s32.totalorder %s50_s22, %s50_s22 }
  0x2d   :  { %p455_p5 = scmp.ne.s32.totalorder %s50_s22, %s454_s21  ;;  %p460_p7 = scmp.lt.s32.totalorder %s454_s21, %s454_s21 }
  0x2f   :  { %p461_p8 = por %p460_p7, %p459_p6 }
  0x31   :  { %p462_p9 = pnand %p461_p8, %p455_p5 }
  0x33   :  { %465 = shalt.err (!%p462_p9)
}
  0x34   :  { %55 = dma.hbm_to_vmem [thread:$0]  %s714_s4, 512, %s50_s22, [#allocation9], %s541_s15, %s541_s15, %s542_s16  }
  0x35   :  { %532 = dma.done.wait [#allocation6], 16  }
  0x36   :  { %533 = vsyncadd [#allocation6], 4294967280 }
  0x37   :  { %534 = dma.done.wait [#allocation9], 768  }
  0x38   :  { %535 = vsyncadd [#allocation9], 4294966528  ;;  %v545_v0 = vmov 0.0|0.0   ;;  %vm546_vm0 = vmmov 0   ;;  %v547_v1 = vmov 0.0   ;;  %vm84_vm1 = vcmask 1041408  }
  0x39   :  { %367 = vmatprep.subr.bf16.mxu0 %v545_v0  ;;  %371 = vmatprep.subr.bf16.mxu1 %v545_v0  ;;  %v77_v2 = vld [vmem:[#allocation8] sm:$0xff]  ;;  %v78_v3 = vld [vmem:[#allocation8 + $0x8] sm:$0x3]  ;;  %vm548_vm2 = vmmov 1   ;;  %vm72_vm4 = vcmask 253952   ;;  %v159_v5 = vld [vmem:[#allocation10] sm:$0xff]  ;;  %v270_v35 = vlaneseq }
  0x3a   :  { %353 = vmatprep.mubr.msk.f32.mxu0 %vm546_vm0, %v547_v1  ;;  %364 = vmatprep.mubr.msk.f32.mxu1 %vm546_vm0, %v547_v1  ;;  %vm369_vm3 = vmpackc.low %vm84_vm1, %vm548_vm2  ;;  %v368_v4 = vpack.c.bf16 %v78_v3, %v77_v2  ;;  %v160_v6 = vld [vmem:[#allocation10 + $0x8] sm:$0xff]  ;;  %v161_v7 = vld [vmem:[#allocation10 + $0x10] sm:$0xff]  ;;  %vm80_vm5 = vcmask 80896   ;;  %vm166_vm6 = vcmask 261120   ;;  %s549_s24 = smov 32   ;;  %s552_s25 = smov [#allocation12]  }
  0x3b   :  { %v372_v8 = vpack.c.bf16 %v160_v6, %v159_v5  ;;  %v162_v9 = vld [vmem:[#allocation10 + $0x18] sm:$0xff]  ;;  %v71_v10 = vld [vmem:[%s711_s1] sm:$0x1]  ;;  %v76_v11 = vld [vmem:[#allocation5] sm:$0x1]  ;;  %v271_v36 = vshrl.u32 %v270_v35, 7 }
  0x3c   :  { %370 = vmatpush3.bf16.msk.msra.mxu0 %vm369_vm3, %v368_v4  ;;  %73 = vst.msk [vmem:[#allocation2] sm:$0x1] %vm72_vm4, %v71_v10  ;;  %v375_v12 = vpack.c.bf16 %v162_v9, %v161_v7  ;;  %v74_v14 = vld [vmem:[%s712_s2] sm:$0x1]  ;;  %s550_s2 = smov 96   ;;  %s310_s26 = sshll.u32 %s552_s25, 4  ;;  %s311_s26 = int_to_ptr.vmem [resolvable:$true] %s310_s26 }
  0x3d   :  { %373 = vmatpush3.bf16.msra.mxu1 %v372_v8  ;;  %75 = vst.msk [vmem:[#allocation3] sm:$0x1] %vm72_vm4, %v74_v14  ;;  %v79_v15 = vld [vmem:[%s715_s5] sm:$0x1]  ;;  %v272_v37 = vsub.s32 0, %v271_v36  ;;  %s551_s5 = smov 64   ;;  %p471_p11 = scmp.lt.s32.totalorder %s311_s26, %s311_s26 }
  0x3e   :  { %374 = vmatprep.subr.bf16.mxu1 %v545_v0  ;;  %s553_s27 = smov [#allocation11]   ;;  %s554_s30 = smov [#allocation14]  }
  0x3f   :  { %354 = vmatmul.mubr.msk.f32.vlgmr.msra.gmra.mrb[0].mxu0 %vm80_vm5, %v76_v11  ;;  %s300_s29 = sshll.u32 %s553_s27, 4  ;;  %s320_s3 = sshll.u32 %s554_s30, 4  ;;  %s655_s29 = int_to_ptr.vmem [resolvable:$true] %s300_s29  ;;  %s660_s3 = int_to_ptr.vmem [resolvable:$true] %s320_s3 }
  0x40   :  { %s466_s28 = scalar_lea.vmem %s311_s26, 16  ;;  %s470_s9 = scalar_lea.vmem %s311_s26, 32 }
  0x41   :  { %376 = vmatpush3.bf16.msra.mxu1 %v375_v12  ;;  %p467_p10 = scmp.ne.s32.totalorder %s311_s26, %s466_s28  ;;  %p472_p12 = scmp.lt.s32.totalorder %s470_s9, %s466_s28 }
  0x43   :  { %v163_v13 = vld [vmem:[#allocation2] sm:$0x1]  ;;  %p473_p13 = por %p472_p12, %p471_p11 }
  0x44   :  { %365 = vmatmul.mubr.msk.f32.vlgmr.msra.gmra.mrb[0].mxu1 %vm166_vm6, %v163_v13  ;;  %v164_v24 = vld [vmem:[#allocation3] sm:$0x1] }
  0x45   :  { %p474_p0 = pnand %p473_p13, %p467_p10 }
 0x112   :  { %v154_v16 = vpop.f32.mrb[0].mxu0 }
 0x113   :  { %v155_v17 = vadd.f32 %v154_v16, %v79_v15  ;;  %v355_v18 = vpop.f32.mrb[1].mxu0 }
 0x115   :  { %158 = vst [vmem:[#allocation4] sm:$0x1] %v155_v17 }
 0x117   :  { %v236_v19 = vpop.f32.mrb[0].mxu1 }
 0x118   :  { %v366_v20 = vpop.f32.mrb[1].mxu1 }
 0x11c   :  { %v165_v21 = vld [vmem:[#allocation4] sm:$0x1] }
 0x11d   :  { %v240_v22 = vadd.f32 %v236_v19, %v165_v21 }
 0x11f   :  { %392 = vtanh.f32 %v240_v22  ;;  %v340_v25 = vmul.f32 -1.442695, %v240_v22 }
 0x121   :  { %394 = vpow2.f32 %v340_v25 }
 0x129   :  { %v393_v23 = vpop.eup %392 }
 0x12a   :  { %254 = vrot.lane.b32.xlu0 %v393_v23, %s549_s24 }
 0x12b   :  { %v395_v26 = vpop.eup %394 }
 0x12c   :  { %v244_v27 = vadd.f32 1.0, %v395_v26 }
 0x12e   :  { %249 = vrot.lane.b32.xlu0 %v164_v24, %s549_s24  ;;  %396 = vrcp.f32 %v244_v27 }
 0x138   :  { %v397_v28 = vpop.eup %396 }
 0x19c   :  { %v255_v29 = vpop.permute.xlu0 %254 }
 0x19d   :  { %v257_v30 = vmul.f32 %v397_v28, %v255_v29 }
 0x19f   :  { %259 = vrot.lane.b32.xlu1 %v257_v30, %s549_s24 }
 0x1a0   :  { %v250_v31 = vpop.permute.xlu0 %249 }
 0x1a1   :  { %v252_v32 = vmul.f32 %v397_v28, %v250_v31 }
 0x211   :  { %v260_v33 = vpop.permute.xlu1 %259 }
 0x212   :  { %v262_v34 = vadd.f32 %v260_v33, %v252_v32 }
 0x214   :  { %398 = vtanh.f32 %v262_v34  ;;  %v284_v39 = vrot.slane %v262_v34, %v272_v37 }
 0x21e   :  { %v399_v38 = vpop.eup %398 }
 0x21f   :  { %265 = vrot.lane.b32.xlu1 %v399_v38, %s549_s24 }
 0x223   :  { %285 = vrot.lane.b32.xlu1 %v284_v39, %s550_s2 }
 0x291   :  { %v266_v40 = vpop.permute.xlu1 %265 }
 0x292   :  { %v268_v41 = vmul.f32 %v397_v28, %v266_v40 }
 0x294   :  { %v273_v42 = vrot.slane %v268_v41, %v272_v37 }
 0x295   :  { %v286_v43 = vpop.permute.xlu1 %285 }
 0x296   :  { %288 = vst.msk [vmem:[#allocation3] sm:$0x1] %vm72_vm4, %v286_v43  ;;  %293 = vst.msk [vmem:[#allocation14] sm:$0x1] %vm72_vm4, %v286_v43  ;;  %274 = vrot.lane.b32.xlu0 %v273_v42, %s551_s5 }
 0x308   :  { %v275_v44 = vpop.permute.xlu0 %274 }
 0x309   :  { %279 = vst.msk [vmem:[#allocation2] sm:$0x1] %vm72_vm4, %v275_v44  ;;  %278 = vst.msk [vmem:[#allocation11] sm:$0x1] %vm72_vm4, %v275_v44 }
 0x30a   :  { %292 = vst.msk [vmem:[#allocation12] sm:$0x1] %vm72_vm4, %v275_v44 }
 0x30b   :  { %477 = shalt.err (!%p474_p0)
}
 0x30c   :  { %s478_s12 = scalar_lea.hbm %s717_s7, 16 }
 0x30d   :  { %p479_p1 = scmp.ne.s32.totalorder %s717_s7, %s478_s12  ;;  %p482_p2 = scmp.lt.u32.totalorder %s478_s12, %s717_s7 }
 0x30f   :  { %p484_p3 = pnand %p482_p2, %p479_p1 }
 0x311   :  { %487 = shalt.err (!%p484_p3)
}
 0x312   :  { %313 = dma.vmem_to_hbm [thread:$0]  %s311_s26, 16, %s717_s7, [#allocation13]  }
 0x313   :  { %s488_s0 = scalar_lea.vmem %s655_s29, 16  ;;  %s492_s20 = scalar_lea.vmem %s655_s29, 32 }
 0x314   :  { %p489_p4 = scmp.ne.s32.totalorder %s655_s29, %s488_s0  ;;  %p493_p5 = scmp.lt.s32.totalorder %s655_s29, %s655_s29 }
 0x315   :  { %p494_p6 = scmp.lt.s32.totalorder %s492_s20, %s488_s0 }
 0x317   :  { %p495_p7 = por %p494_p6, %p493_p5 }
 0x319   :  { %p496_p8 = pnand %p495_p7, %p489_p4 }
 0x31b   :  { %499 = shalt.err (!%p496_p8)
}
 0x31c   :  { %s500_s16 = scalar_lea.hbm %s716_s6, 16 }
 0x31d   :  { %p501_p9 = scmp.ne.s32.totalorder %s716_s6, %s500_s16  ;;  %p504_p10 = scmp.lt.u32.totalorder %s500_s16, %s716_s6 }
 0x31f   :  { %p506_p11 = pnand %p504_p10, %p501_p9 }
 0x321   :  { %509 = shalt.err (!%p506_p11)
}
 0x322   :  { %303 = dma.vmem_to_hbm [thread:$0]  %s655_s29, 16, %s716_s6, [#allocation7]  }
 0x323   :  { %s510_s5 = scalar_lea.vmem %s660_s3, 16  ;;  %s514_s25 = scalar_lea.vmem %s660_s3, 32 }
 0x324   :  { %p511_p12 = scmp.ne.s32.totalorder %s660_s3, %s510_s5  ;;  %p515_p13 = scmp.lt.s32.totalorder %s660_s3, %s660_s3 }
 0x325   :  { %p516_p0 = scmp.lt.s32.totalorder %s514_s25, %s510_s5 }
 0x327   :  { %p517_p1 = por %p516_p0, %p515_p13 }
 0x329   :  { %p518_p2 = pnand %p517_p1, %p511_p12 }
 0x32b   :  { %521 = shalt.err (!%p518_p2)
}
 0x32c   :  { %s522_s30 = scalar_lea.hbm %s718_s8, 16 }
 0x32d   :  { %p523_p3 = scmp.ne.s32.totalorder %s718_s8, %s522_s30  ;;  %p526_p4 = scmp.lt.u32.totalorder %s522_s30, %s718_s8 }
 0x32f   :  { %p528_p5 = pnand %p526_p4, %p523_p3 }
 0x331   :  { %531 = shalt.err (!%p528_p5)
}
 0x332   :  { %323 = dma.vmem_to_hbm [thread:$0]  %s660_s3, 16, %s718_s8, [#allocation13]  }
 0x333   :  { %536 = dma.done.wait [#allocation7], 16  }
 0x334   :  { %537 = vsyncadd [#allocation7], 4294967280 }
 0x335   :  { %538 = dma.done.wait [#allocation13], 32  }
 0x336   :  { %539 = vsyncadd [#allocation13], 4294967264 }
 0x337   :  { %333 = vsyncpa [#allocation6], 1 }
 0x338   :  { %334 = vsyncpa [#allocation9], 1 }
 0x339   :  { %335 = vsyncpa [#allocation7], 1 }
 0x33a   :  { %336 = vsyncpa [#allocation13], 1 }

</bundles_post_ra>
